<compile_context>
chip_gen: v7x
topology: tpu7x:2x2x1
jax: 0.10.0
libtpu: 0.0.40
codegen_flags: <defaults>
</compile_context>

<pallas_src>
import math

import jax
import jax.numpy as jnp
from jax.experimental import pallas as pl
from jax.experimental.pallas import tpu as pltpu


# ---------------------------------------------------------------------------
# Fused MLP kernel: grid = (batch tiles, output-column tiles)
# ---------------------------------------------------------------------------

def _fused_mlp_kernel(x_ref, w1_ref, b1_ref, w2_ref, b2_ref, o_ref, h_ref):
    """out = SiLU(x @ w1 + b1) @ w2 + b2 for one (bb, tn) output tile.

    x_ref  : (bb, cond_dim)   f32   (cast to bf16 in-kernel)
    w1_ref : (cond_dim, emb)  bf16  (resident)
    b1_ref : (1, emb)         f32   (resident)
    w2_ref : (emb, tn)        bf16  (resident or streamed over j)
    b2_ref : (1, tn)          f32
    o_ref  : (bb, tn)         out dtype
    h_ref  : (bb, emb)        bf16 VMEM scratch (hidden activation cache)
    """
    # Hidden activation is computed once per batch tile (first column step)
    # and reused for every output-column tile j.
    @pl.when(pl.program_id(1) == 0)
    def _():
        x = x_ref[...].astype(jnp.bfloat16)       # in-kernel cast (VPU, free)
        h = jnp.dot(x, w1_ref[...], preferred_element_type=jnp.float32)
        h = h + b1_ref[...]                       # f32 bias add
        h = h * jax.nn.sigmoid(h)                 # SiLU in f32 (EUP slot)
        h_ref[...] = h.astype(h_ref.dtype)        # cache as bf16 for 2nd matmul

    y = jnp.dot(h_ref[...], w2_ref[...], preferred_element_type=jnp.float32)
    o_ref[...] = (y + b2_ref[...]).astype(o_ref.dtype)


# ---------------------------------------------------------------------------
# Tiling / spec helpers
# ---------------------------------------------------------------------------

def _round_up(x, m):
    return ((x + m - 1) // m) * m


def _choose_bb(b, block_b):
    """Batch tile size.

    - 256-row tiles for large batches: fills the 2x256x256 MXU (v6e/v7x) and
      gives >= 2 parallel grid steps so both v7x TensorCores are used.
    - Whole batch in one tile otherwise (no padding, no out[:b] copy).
    - Ragged large batches: 16-aligned tile (bf16 sublane packing) + padding.
    """
    if b > 256 and b % 256 == 0:
        return 256
    if b <= block_b:
        return b
    return _round_up(min(block_b, b), 16)


def _choose_tn(emb_dim):
    """Output-column tile.  Keep w2 fully resident for moderate widths; N-tile
    it once emb_dim^2 stops fitting comfortably in VMEM (v7x: 64 MiB)."""
    if emb_dim >= 2048 and emb_dim % 512 == 0:
        return 512
    return emb_dim


def _resident_spec(block_shape, index_map, single_buffer):
    """Constant-index (resident) block; single-buffer it when worthwhile."""
    if single_buffer:
        try:
            return pl.BlockSpec(block_shape, index_map,
                                pipeline_mode=pl.Buffered(1))
        except Exception:  # older jax without pipeline_mode support
            pass
    return pl.BlockSpec(block_shape, index_map)


def _vmem_limit_bytes():
    """Generation-gated scoped-VMEM budget (v5e/v6e: 128 MiB physical,
    v7x: 64 MiB per TensorCore)."""
    try:
        kind = jax.devices()[0].device_kind.lower()
    except Exception:
        kind = ""
    if "v7" in kind or "7x" in kind:
        return 48 * 1024 * 1024
    if "v5" in kind or "v6" in kind:
        return 96 * 1024 * 1024
    return 64 * 1024 * 1024  # safe default on any generation


# ---------------------------------------------------------------------------
# pallas_call wrapper
# ---------------------------------------------------------------------------

def condition_embedding_forward(params, cond, *, block_b=512,
                                out_dtype=jnp.float32):
    """cond (B, cond_dim) f32 -> (B, emb_dim) in `out_dtype` (f32 default;
    pass jnp.bfloat16 if the consumer accepts it — halves output writeback)."""
    b, cond_dim = cond.shape
    emb_dim = params["w1_bf16"].shape[1]

    # bf16 weights were cached at init; biases stay f32 (added to f32 acc).
    w1 = params["w1_bf16"]
    w2 = params["w2_bf16"]
    b1 = params["b1"]            # (1, emb_dim) f32
    b2 = params["b2"]            # (1, emb_dim) f32

    bb = _choose_bb(b, block_b)
    tn = _choose_tn(emb_dim)
    n_col = emb_dim // tn

    padded_b = _round_up(b, bb)
    x = cond
    if padded_b != b:            # only on the ragged large-batch path
        x = jnp.pad(x, ((0, padded_b - b), (0, 0)))

    # Single-buffering resident weights only pays off once they are big.
    single_buffer = emb_dim >= 1024

    in_specs = [
        pl.BlockSpec((bb, cond_dim), lambda i, j: (i, 0)),            # x tile
        _resident_spec((cond_dim, emb_dim), lambda i, j: (0, 0),
                       single_buffer),                                # w1
        _resident_spec((1, emb_dim), lambda i, j: (0, 0),
                       single_buffer),                                # b1
    ]
    if n_col == 1:
        in_specs.append(_resident_spec((emb_dim, tn), lambda i, j: (0, 0),
                                       single_buffer))                # w2 resident
        in_specs.append(_resident_spec((1, tn), lambda i, j: (0, 0),
                                       single_buffer))                # b2 resident
    else:
        # Streamed over output columns -> keep default double-buffering.
        in_specs.append(pl.BlockSpec((emb_dim, tn), lambda i, j: (0, j)))
        in_specs.append(pl.BlockSpec((1, tn), lambda i, j: (0, j)))

    out = pl.pallas_call(
        _fused_mlp_kernel,
        out_shape=jax.ShapeDtypeStruct((padded_b, emb_dim), out_dtype),
        grid=(padded_b // bb, n_col),
        in_specs=in_specs,
        out_specs=pl.BlockSpec((bb, tn), lambda i, j: (i, j)),
        scratch_shapes=[pltpu.VMEM((bb, emb_dim), jnp.bfloat16)],     # hidden cache
        compiler_params=pltpu.CompilerParams(
            dimension_semantics=("parallel", "arbitrary"),
            vmem_limit_bytes=_vmem_limit_bytes()),
    )(x, w1, b1, w2, b2)

    if padded_b != b:
        out = out[:b]
    return out


# ---------------------------------------------------------------------------
# Parameter init (mimics PyTorch nn.Linear default: U(-1/sqrt(fan_in), ...))
# Weights stored already transposed to (in, out); bf16 copies cached ONCE.
# ---------------------------------------------------------------------------

def init_params(key, cond_dim, emb_dim):
    k1, k2, k3, k4 = jax.random.split(key, 4)
    s1 = 1.0 / math.sqrt(cond_dim)
    s2 = 1.0 / math.sqrt(emb_dim)
    w1 = jax.random.uniform(k1, (cond_dim, emb_dim), jnp.float32, -s1, s1)
    w2 = jax.random.uniform(k3, (emb_dim, emb_dim), jnp.float32, -s2, s2)
    return dict(
        w1=w1, w2=w2,                       # f32 masters (reference / training)
        w1_bf16=w1.astype(jnp.bfloat16),    # cached MXU copies: no per-call cast
        w2_bf16=w2.astype(jnp.bfloat16),
        b1=jax.random.uniform(k2, (1, emb_dim), jnp.float32, -s1, s1),
        b2=jax.random.uniform(k4, (1, emb_dim), jnp.float32, -s2, s2),
    )


def reference_forward(params, cond):
    """Pure-JAX f32 reference for correctness checking."""
    h = cond @ params["w1"] + params["b1"]
    h = h * jax.nn.sigmoid(h)
    return h @ params["w2"] + params["b2"]


# ---------------------------------------------------------------------------
# Main
# ---------------------------------------------------------------------------

if __name__ == "__main__":
    key = jax.random.PRNGKey(0)
    k_param, k_x = jax.random.split(key)

    # Small shapes consistent with the module: batch=8, cond_dim=32, emb_dim=128
    # (emb_dim a multiple of 128 keeps the output store lane-dense).
    batch, cond_dim, emb_dim = 8, 32, 128
    params = init_params(k_param, cond_dim, emb_dim)
    cond = jax.random.normal(k_x, (batch, cond_dim), jnp.float32)

    fwd = jax.jit(condition_embedding_forward)
    out = fwd(params, cond)
    jax.block_until_ready(out)

    assert out.shape == (batch, emb_dim), out.shape

    # Tolerance check vs pure-JAX f32 reference (bf16 MXU inputs => loose tol).
    ref = reference_forward(params, cond)
    rel_err = float(jnp.max(jnp.abs(out - ref)) / (jnp.max(jnp.abs(ref)) + 1e-6))
    assert rel_err < 5e-2, rel_err

    print("KERNEL_OK")
</pallas_src>

<mosaic_0001>
module attributes {stable_mosaic.version = 11 : i64} {
  func.func @_fused_mlp_kernel(%arg0: i32, %arg1: i32, %arg2: memref<8x32xf32, #tpu.memory_space<vmem>>, %arg3: memref<32x128xbf16, #tpu.memory_space<vmem>>, %arg4: memref<1x128xf32, #tpu.memory_space<vmem>>, %arg5: memref<128x128xbf16, #tpu.memory_space<vmem>>, %arg6: memref<1x128xf32, #tpu.memory_space<vmem>>, %arg7: memref<8x128xf32, #tpu.memory_space<vmem>>, %arg8: memref<8x128xbf16, #tpu.memory_space<vmem>>) attributes {dimension_semantics = [#tpu.dimension_semantics<parallel>, #tpu.dimension_semantics<arbitrary>], iteration_bounds = array<i64: 1, 1>, scalar_prefetch = 0 : i64, scratch_operands = 1 : i64, tpu.core_type = #tpu.core_type<tc>, window_params = [{transform_indices = @transform_0, window_bounds = array<i64: 8, 32>}, {pipeline_mode = #tpu.pipeline_mode<synchronous>, transform_indices = @transform_1, window_bounds = array<i64: 32, 128>}, {pipeline_mode = #tpu.pipeline_mode<synchronous>, transform_indices = @transform_2, window_bounds = array<i64: 1, 128>}, {pipeline_mode = #tpu.pipeline_mode<synchronous>, transform_indices = @transform_3, window_bounds = array<i64: 128, 128>}, {pipeline_mode = #tpu.pipeline_mode<synchronous>, transform_indices = @transform_4, window_bounds = array<i64: 1, 128>}, {transform_indices = @transform_5, window_bounds = array<i64: 8, 128>}]} {
    %c0_i32 = arith.constant 0 : i32
    %0 = arith.cmpi eq, %arg1, %c0_i32 : i32
    %1 = arith.extui %0 : i1 to i32
    %c0_i32_0 = arith.constant 0 : i32
    %2 = arith.cmpi ne, %1, %c0_i32_0 : i32
    scf.if %2 {
      %c0_8 = arith.constant 0 : index
      %c0_9 = arith.constant 0 : index
      %10 = vector.load %arg2[%c0_8, %c0_9] : memref<8x32xf32, #tpu.memory_space<vmem>>, vector<8x32xf32>
      %11 = arith.truncf %10 : vector<8x32xf32> to vector<8x32xbf16>
      %c0_10 = arith.constant 0 : index
      %c0_11 = arith.constant 0 : index
      %12 = vector.load %arg3[%c0_10, %c0_11] : memref<32x128xbf16, #tpu.memory_space<vmem>>, vector<32x128xbf16>
      %cst_12 = arith.constant dense<0.000000e+00> : vector<8x128xf32>
      %13 = tpu.matmul %11, %12, %cst_12 {dimension_numbers = #tpu.dot_dimension_numbers<[1], [0], [0], [1], [0, 0, 1, 1], [], []>} : vector<8x32xbf16>, vector<32x128xbf16>, vector<8x128xf32> -> vector<8x128xf32>
      %c0_13 = arith.constant 0 : index
      %c0_14 = arith.constant 0 : index
      %14 = vector.load %arg4[%c0_13, %c0_14] : memref<1x128xf32, #tpu.memory_space<vmem>>, vector<1x128xf32>
      %15 = vector.broadcast %14 : vector<1x128xf32> to vector<8x128xf32>
      %16 = arith.addf %13, %15 : vector<8x128xf32>
      %17 = arith.negf %16 : vector<8x128xf32>
      %18 = math.exp %17 : vector<8x128xf32>
      %cst_15 = arith.constant 1.000000e+00 : f32
      %19 = vector.broadcast %cst_15 : f32 to vector<8x128xf32>
      %20 = arith.addf %19, %18 : vector<8x128xf32>
      %21 = arith.divf %19, %20 : vector<8x128xf32>
      %22 = arith.mulf %16, %21 : vector<8x128xf32>
      %23 = arith.truncf %22 : vector<8x128xf32> to vector<8x128xbf16>
      %c0_16 = arith.constant 0 : index
      %c0_17 = arith.constant 0 : index
      %24 = vector.load %arg8[%c0_16, %c0_17] : memref<8x128xbf16, #tpu.memory_space<vmem>>, vector<8x128xbf16>
      tpu.vector_store %arg8[%c0_16, %c0_17], %23 {strides = array<i32>} : memref<8x128xbf16, #tpu.memory_space<vmem>>, vector<8x128xbf16>,
    } else {
    }
    %c0 = arith.constant 0 : index
    %c0_1 = arith.constant 0 : index
    %3 = vector.load %arg8[%c0, %c0_1] : memref<8x128xbf16, #tpu.memory_space<vmem>>, vector<8x128xbf16>
    %c0_2 = arith.constant 0 : index
    %c0_3 = arith.constant 0 : index
    %4 = vector.load %arg5[%c0_2, %c0_3] : memref<128x128xbf16, #tpu.memory_space<vmem>>, vector<128x128xbf16>
    %cst = arith.constant dense<0.000000e+00> : vector<8x128xf32>
    %5 = tpu.matmul %3, %4, %cst {dimension_numbers = #tpu.dot_dimension_numbers<[1], [0], [0], [1], [0, 0, 1, 1], [], []>} : vector<8x128xbf16>, vector<128x128xbf16>, vector<8x128xf32> -> vector<8x128xf32>
    %c0_4 = arith.constant 0 : index
    %c0_5 = arith.constant 0 : index
    %6 = vector.load %arg6[%c0_4, %c0_5] : memref<1x128xf32, #tpu.memory_space<vmem>>, vector<1x128xf32>
    %7 = vector.broadcast %6 : vector<1x128xf32> to vector<8x128xf32>
    %8 = arith.addf %5, %7 : vector<8x128xf32>
    %c0_6 = arith.constant 0 : index
    %c0_7 = arith.constant 0 : index
    %9 = vector.load %arg7[%c0_6, %c0_7] : memref<8x128xf32, #tpu.memory_space<vmem>>, vector<8x128xf32>
    tpu.vector_store %arg7[%c0_6, %c0_7], %8 {strides = array<i32>} : memref<8x128xf32, #tpu.memory_space<vmem>>, vector<8x128xf32>,
    return
  }
  func.func @transform_0(%arg0: i32, %arg1: i32) -> (i32, i32) {
    %c0_i32 = arith.constant 0 : i32
    %c0_i32_0 = arith.constant 0 : i32
    return %arg0, %c0_i32 : i32, i32
  }
  func.func @transform_1(%arg0: i32, %arg1: i32) -> (i32, i32) {
    %c0_i32 = arith.constant 0 : i32
    %c0_i32_0 = arith.constant 0 : i32
    %c0_i32_1 = arith.constant 0 : i32
    return %c0_i32, %c0_i32_0 : i32, i32
  }
  func.func @transform_2(%arg0: i32, %arg1: i32) -> (i32, i32) {
    %c0_i32 = arith.constant 0 : i32
    %c0_i32_0 = arith.constant 0 : i32
    %c0_i32_1 = arith.constant 0 : i32
    return %c0_i32, %c0_i32_0 : i32, i32
  }
  func.func @transform_3(%arg0: i32, %arg1: i32) -> (i32, i32) {
    %c0_i32 = arith.constant 0 : i32
    %c0_i32_0 = arith.constant 0 : i32
    %c0_i32_1 = arith.constant 0 : i32
    return %c0_i32, %c0_i32_0 : i32, i32
  }
  func.func @transform_4(%arg0: i32, %arg1: i32) -> (i32, i32) {
    %c0_i32 = arith.constant 0 : i32
    %c0_i32_0 = arith.constant 0 : i32
    %c0_i32_1 = arith.constant 0 : i32
    return %c0_i32, %c0_i32_0 : i32, i32
  }
  func.func @transform_5(%arg0: i32, %arg1: i32) -> (i32, i32) {
    %c0_i32 = arith.constant 0 : i32
    return %arg0, %arg1 : i32, i32
  }
}

</mosaic_0001>

<bundles_post_ra>
// kernel: condition_embedding_forward.1
= control target key start
LH: loop header
LB: loop body
LE: loop exit
PB: predicated region body
PF: predicated region fallthrough
CT: control target
= control target key end

     0   :  { %10 = vsyncpa [#allocation4], 0  ;;  %s626_s0 = inlined_call_operand.hbm [shape: f32[8,32], index: 0, kind: input, shape index: {}]   ;;  %s627_s1 = inlined_call_operand.hbm [shape: bf16[32,128], index: 1, kind: input, shape index: {}]   ;;  %s628_s2 = inlined_call_operand.hbm [shape: f32[1,128], index: 2, kind: input, shape index: {}]   ;;  %s629_s3 = inlined_call_operand.hbm [shape: bf16[128,128], index: 3, kind: input, shape index: {}]   ;;  %s630_s4 = inlined_call_operand.hbm [shape: f32[1,128], index: 4, kind: input, shape index: {}]   ;;  %s631_s5 = inlined_call_operand.hbm [shape: f32[8,128], index: 5, kind: output, shape index: {}]  }
   0x1   :  { %11 = vsyncpa [#allocation7], 0 }
   0x2   :  { %12 = vsyncpa [#allocation10], 0 }
   0x3   :  { %13 = vsyncpa [#allocation5], 0  ;;  %s514_s18 = smov [#allocation6]   ;;  %s374_s22 = scalar_lea.hbm %s627_s1, 256 }
   0x4   :  { %s29_s19 = sshll.u32 %s514_s18, 4  ;;  %p375_p0 = scmp.ne.s32.totalorder %s627_s1, %s374_s22  ;;  %s30_s19 = int_to_ptr.vmem [resolvable:$true] %s29_s19 }
   0x5   :  { %p378_p1 = scmp.lt.u32.totalorder %s374_s22, %s627_s1 }
   0x7   :  { %p380_p2 = pnand %p378_p1, %p375_p0 }
   0x9   :  { %383 = shalt.err (!%p380_p2)
}
   0xa   :  { %s384_s27 = scalar_lea.vmem %s30_s19, 256  ;;  %p389_p4 = scmp.lt.s32.totalorder %s30_s19, %s30_s19 }
   0xb   :  { %p385_p3 = scmp.ne.s32.totalorder %s30_s19, %s384_s27  ;;  %p390_p5 = scmp.lt.s32.totalorder %s384_s27, %s384_s27 }
   0xd   :  { %p391_p6 = por %p390_p5, %p389_p4 }
   0xf   :  { %p392_p7 = pnand %p391_p6, %p385_p3 }
  0x11   :  { %395 = shalt.err (!%p392_p7)
}
  0x12   :  { %s515_s28 = smov 64   ;;  %s516_s29 = smov 4  }
  0x13   :  { %35 = dma.hbm_to_vmem [thread:$0]  %s627_s1, 256, %s30_s19, [#allocation7], %s515_s28, %s515_s28, %s516_s29  }
  0x14   :  { %s517_s7 = smov [#allocation9]   ;;  %s518_s9 = smov [#allocation3]  }
  0x15   :  { %s51_s8 = sshll.u32 %s517_s7, 4  ;;  %s20_s10 = sshll.u32 %s518_s9, 4  ;;  %s52_s8 = int_to_ptr.vmem [resolvable:$true] %s51_s8  ;;  %s21_s10 = int_to_ptr.vmem [resolvable:$true] %s20_s10 }
  0x16   :  { %s396_s13 = scalar_lea.hbm %s629_s3, 1024 }
  0x17   :  { %p397_p8 = scmp.ne.s32.totalorder %s629_s3, %s396_s13  ;;  %p400_p9 = scmp.lt.u32.totalorder %s396_s13, %s629_s3 }
  0x19   :  { %p402_p10 = pnand %p400_p9, %p397_p8 }
  0x1b   :  { %405 = shalt.err (!%p402_p10)
}
  0x1c   :  { %s406_s1 = scalar_lea.vmem %s52_s8, 1024  ;;  %p411_p12 = scmp.lt.s32.totalorder %s52_s8, %s52_s8 }
  0x1d   :  { %p407_p11 = scmp.ne.s32.totalorder %s52_s8, %s406_s1  ;;  %p412_p13 = scmp.lt.s32.totalorder %s406_s1, %s406_s1 }
  0x1f   :  { %p413_p0 = por %p412_p13, %p411_p12 }
  0x21   :  { %p414_p1 = pnand %p413_p0, %p407_p11 }
  0x23   :  { %417 = shalt.err (!%p414_p1)
}
  0x24   :  { %57 = dma.hbm_to_vmem [thread:$0]  %s629_s3, 1024, %s52_s8, [#allocation10], %s515_s28, %s515_s28, %s516_s29  }
  0x25   :  { %s418_s22 = scalar_lea.hbm %s626_s0, 128 }
  0x26   :  { %p419_p2 = scmp.ne.s32.totalorder %s626_s0, %s418_s22  ;;  %p422_p3 = scmp.lt.u32.totalorder %s418_s22, %s626_s0 }
  0x28   :  { %p424_p4 = pnand %p422_p3, %p419_p2 }
  0x2a   :  { %427 = shalt.err (!%p424_p4)
}
  0x2b   :  { %s428_s27 = scalar_lea.vmem %s21_s10, 128  ;;  %p433_p6 = scmp.lt.s32.totalorder %s21_s10, %s21_s10 }
  0x2c   :  { %p429_p5 = scmp.ne.s32.totalorder %s21_s10, %s428_s27  ;;  %p434_p7 = scmp.lt.s32.totalorder %s428_s27, %s428_s27 }
  0x2e   :  { %p435_p8 = por %p434_p7, %p433_p6 }
  0x30   :  { %p436_p9 = pnand %p435_p8, %p429_p5 }
  0x32   :  { %439 = shalt.err (!%p436_p9)
}
  0x33   :  { %23 = dma.hbm_to_vmem [thread:$0]  %s626_s0, 128, %s21_s10, [#allocation4]  }
  0x34   :  { %s519_s29 = smov [#allocation8]   ;;  %s520_s6 = smov [#allocation11]  }
  0x35   :  { %s42_s30 = sshll.u32 %s519_s29, 4  ;;  %s64_s7 = sshll.u32 %s520_s6, 4  ;;  %s43_s30 = int_to_ptr.vmem [resolvable:$true] %s42_s30  ;;  %s65_s7 = int_to_ptr.vmem [resolvable:$true] %s64_s7 }
  0x36   :  { %s440_s11 = scalar_lea.hbm %s628_s2, 16 }
  0x37   :  { %p441_p10 = scmp.ne.s32.totalorder %s628_s2, %s440_s11  ;;  %p444_p11 = scmp.lt.u32.totalorder %s440_s11, %s628_s2 }
  0x39   :  { %p446_p12 = pnand %p444_p11, %p441_p10 }
  0x3b   :  { %449 = shalt.err (!%p446_p12)
}
  0x3c   :  { %s450_s0 = scalar_lea.vmem %s43_s30, 16  ;;  %s454_s10 = scalar_lea.vmem %s43_s30, 32 }
  0x3d   :  { %p451_p13 = scmp.ne.s32.totalorder %s43_s30, %s450_s0  ;;  %p455_p0 = scmp.lt.s32.totalorder %s43_s30, %s43_s30 }
  0x3e   :  { %p456_p1 = scmp.lt.s32.totalorder %s454_s10, %s450_s0 }
  0x40   :  { %p457_p2 = por %p456_p1, %p455_p0 }
  0x42   :  { %p458_p3 = pnand %p457_p2, %p451_p13 }
  0x44   :  { %461 = shalt.err (!%p458_p3)
}
  0x45   :  { %45 = dma.hbm_to_vmem [thread:$0]  %s628_s2, 16, %s43_s30, [#allocation7]  }
  0x46   :  { %s462_s19 = scalar_lea.hbm %s630_s4, 16 }
  0x47   :  { %p463_p4 = scmp.ne.s32.totalorder %s630_s4, %s462_s19  ;;  %p466_p5 = scmp.lt.u32.totalorder %s462_s19, %s630_s4 }
  0x49   :  { %p468_p6 = pnand %p466_p5, %p463_p4 }
  0x4b   :  { %471 = shalt.err (!%p468_p6)
}
  0x4c   :  { %s472_s24 = scalar_lea.vmem %s65_s7, 16  ;;  %s476_s25 = scalar_lea.vmem %s65_s7, 32 }
  0x4d   :  { %p473_p7 = scmp.ne.s32.totalorder %s65_s7, %s472_s24  ;;  %p477_p8 = scmp.lt.s32.totalorder %s65_s7, %s65_s7 }
  0x4e   :  { %p478_p9 = scmp.lt.s32.totalorder %s476_s25, %s472_s24 }
  0x50   :  { %p479_p10 = por %p478_p9, %p477_p8 }
  0x52   :  { %p480_p11 = pnand %p479_p10, %p473_p7 }
  0x54   :  { %483 = shalt.err (!%p480_p11)
}
  0x55   :  { %67 = dma.hbm_to_vmem [thread:$0]  %s630_s4, 16, %s65_s7, [#allocation10]  }
  0x56   :  { %506 = dma.done.wait [#allocation4], 128  }
  0x57   :  { %507 = vsyncadd [#allocation4], 4294967168 }
  0x58   :  { %508 = dma.done.wait [#allocation7], 272  }
  0x59   :  { %509 = vsyncadd [#allocation7], 4294967024 }
  0x5a   :  { %510 = dma.done.wait [#allocation10], 1040  }
  0x5b   :  { %511 = vsyncadd [#allocation10], 4294966256  ;;  %v521_v0 = vmov 0.0   ;;  %vm522_vm0 = vmmov 0   ;;  %v360_v1 = vld [vmem:[#allocation6] sm:$0xff]   ;;  %v361_v2 = vld [vmem:[#allocation6 + $0x8] sm:$0xff]  }
  0x5c   :  { %322 = vmatprep.subr.bf16.mxu0 %v521_v0  ;;  %326 = vmatprep.mubr.msk.bf16.mxu0 %vm522_vm0, %v521_v0  ;;  %v88_v3 = vld [vmem:[#allocation3] sm:$0xff]  ;;  %vm113_vm1 = vcmask 261120   ;;  %v364_v7 = vld [vmem:[#allocation9 + $0x10] sm:$0xff]   ;;  %v365_v8 = vld [vmem:[#allocation9 + $0x18] sm:$0xff]   ;;  %s523_s4 = smov [#allocation12]  }
  0x5d   :  { %330 = vmatprep.subr.bf16.mxu1 %v521_v0  ;;  %346 = vmatprep.mubr.msk.bf16.mxu1 %vm522_vm0, %v521_v0  ;;  %v89_v4 = vpack.c.bf16 %v88_v3, %v88_v3  ;;  %v362_v5 = vld [vmem:[#allocation9] sm:$0xff]   ;;  %v363_v6 = vld [vmem:[#allocation9 + $0x8] sm:$0xff]   ;;  %v368_v11 = vld [vmem:[#allocation9 + $0x30] sm:$0xff]   ;;  %s285_s27 = sshll.u32 %s523_s4, 4  ;;  %s286_s27 = int_to_ptr.vmem [resolvable:$true] %s285_s27 }
  0x5e   :  { %323 = vmatpush3.bf16.msra.mxu0 %v360_v1  ;;  %331 = vmatpush3.bf16.msra.mxu1 %v362_v5  ;;  %v366_v9 = vld [vmem:[#allocation9 + $0x20] sm:$0xff]   ;;  %v367_v10 = vld [vmem:[#allocation9 + $0x28] sm:$0xff]   ;;  %v369_v12 = vld [vmem:[#allocation9 + $0x38] sm:$0xff]   ;;  %s484_s3 = scalar_lea.vmem %s286_s27, 128  ;;  %p489_p13 = scmp.lt.s32.totalorder %s286_s27, %s286_s27 }
  0x5f   :  { %324 = vmatprep.subr.bf16.mxu0 %v521_v0  ;;  %332 = vmatprep.subr.bf16.mxu1 %v521_v0  ;;  %v296_v13 = vld [vmem:[#allocation8] ss:$0 sm:$0xff]  ;;  %v301_v26 = vld [vmem:[#allocation11] ss:$0 sm:$0xff]  ;;  %p485_p12 = scmp.ne.s32.totalorder %s286_s27, %s484_s3  ;;  %p490_p0 = scmp.lt.s32.totalorder %s484_s3, %s484_s3 }
  0x61   :  { %p491_p1 = por %p490_p0, %p489_p13 }
  0x62   :  { %325 = vmatpush3.bf16.msra.mxu0 %v361_v2  ;;  %333 = vmatpush3.bf16.msra.mxu1 %v363_v6 }
  0x63   :  { %334 = vmatprep.subr.bf16.mxu1 %v521_v0  ;;  %p492_p2 = pnand %p491_p1, %p485_p12 }
  0x65   :  { %327 = vmatmul.mubr.msk.bf16.vlgmr.msra.gmra.mrb[0].mxu0 %vm113_vm1, %v89_v4 }
  0x66   :  { %335 = vmatpush3.bf16.msra.mxu1 %v364_v7 }
  0x67   :  { %336 = vmatprep.subr.bf16.mxu1 %v521_v0 }
  0x6a   :  { %337 = vmatpush3.bf16.msra.mxu1 %v365_v8 }
  0x6b   :  { %338 = vmatprep.subr.bf16.mxu1 %v521_v0 }
  0x6e   :  { %339 = vmatpush3.bf16.msra.mxu1 %v366_v9 }
  0x6f   :  { %340 = vmatprep.subr.bf16.mxu1 %v521_v0 }
  0x72   :  { %341 = vmatpush3.bf16.msra.mxu1 %v367_v10 }
  0x73   :  { %342 = vmatprep.subr.bf16.mxu1 %v521_v0 }
  0x76   :  { %343 = vmatpush3.bf16.msra.mxu1 %v368_v11 }
  0x77   :  { %344 = vmatprep.subr.bf16.mxu1 %v521_v0 }
  0x7a   :  { %345 = vmatpush3.bf16.msra.mxu1 %v369_v12 }
 0x138   :  { %v151_v14 = vpop.f32.mrb[0].mxu0 }
 0x139   :  { %v152_v15 = vadd.f32 %v296_v13, %v151_v14  ;;  %v328_v16 = vpop.f32.mrb[1].mxu0 }
 0x13a   :  { %v154_v17 = vpop.f32.mrb[2].mxu0 }
 0x13b   :  { %v300_v18 = vmul.f32 -1.442695, %v152_v15  ;;  %v329_v19 = vpop.f32.mrb[3].mxu0 }
 0x13d   :  { %370 = vpow2.f32 %v300_v18 }
 0x147   :  { %v371_v20 = vpop.eup %370 }
 0x148   :  { %v160_v21 = vadd.f32 1.0, %v371_v20 }
 0x14a   :  { %372 = vrcp.f32 %v160_v21 }
 0x154   :  { %v373_v22 = vpop.eup %372 }
 0x155   :  { %v163_v23 = vmul.f32 %v373_v22, %v152_v15 }
 0x157   :  { %v164_v24 = vpack.c.bf16 %v163_v23, %v163_v23 }
 0x159   :  { %165 = vst [vmem:[#allocation2] sm:$0xf] %v164_v24 }
 0x160   :  { %v166_v25 = vld [vmem:[#allocation2] sm:$0xf] }
 0x161   :  { %347 = vmatmul.mubr.bf16.vlgmr.msra.gmra.mrb[0].mxu1 %v166_v25 }
 0x234   :  { %v272_v27 = vpop.f32.mrb[0].mxu1 }
 0x235   :  { %v273_v28 = vadd.f32 %v301_v26, %v272_v27  ;;  %v348_v29 = vpop.f32.mrb[1].mxu1 }
 0x236   :  { %v275_v30 = vpop.f32.mrb[2].mxu1 }
 0x237   :  { %278 = vst [vmem:[#allocation12] sm:$0xff] %v273_v28  ;;  %v349_v31 = vpop.f32.mrb[3].mxu1 }
 0x238   :  { %495 = shalt.err (!%p492_p2)
}
 0x239   :  { %s496_s30 = scalar_lea.hbm %s631_s5, 128 }
 0x23a   :  { %p497_p3 = scmp.ne.s32.totalorder %s631_s5, %s496_s30  ;;  %p500_p4 = scmp.lt.u32.totalorder %s496_s30, %s631_s5 }
 0x23c   :  { %p502_p5 = pnand %p500_p4, %p497_p3 }
 0x23e   :  { %505 = shalt.err (!%p502_p5)
}
 0x23f   :  { %288 = dma.vmem_to_hbm [thread:$0]  %s286_s27, 128, %s631_s5, [#allocation5]  }
 0x240   :  { %512 = dma.done.wait [#allocation5], 128  }
 0x241   :  { %513 = vsyncadd [#allocation5], 4294967168 }
 0x242   :  { %292 = vsyncpa [#allocation4], 1 }
 0x243   :  { %293 = vsyncpa [#allocation7], 1 }
 0x244   :  { %294 = vsyncpa [#allocation10], 1 }
 0x245   :  { %295 = vsyncpa [#allocation5], 1 }

</bundles_post_ra>
